<compile_context>
chip_gen: v5e
topology: v5e:2x2
jax: 0.10.0
libtpu: 0.0.40
codegen_flags: <defaults>
</compile_context>

<pallas_src>
import functools
import math

import jax
import jax.numpy as jnp
from jax.experimental import pallas as pl
from jax.experimental.pallas import tpu as pltpu

# ----- model hyper-parameters (module globals in the PyTorch source) -----
D_MODEL = 32
D_K = 16
D_V = 16
N_HEADS = 4
LN_EPS = 1e-5  # nn.LayerNorm default


def _mha_kernel(q_ref, k_ref, v_ref, bias_ref,
                wq_ref, wk_ref, wv_ref, wfc_ref,
                out_ref, *attn_refs,
                n_heads, d_k, d_v, d_model):
    # Per-grid-step refs (one batch block):
    #   q_ref/k_ref/v_ref : (Bblk, S, d_model)
    #   bias_ref          : (Bblk, S, S) f32 additive mask bias (-1e9 where masked, else 0)
    #   wq_ref/wk_ref     : (d_model, H*d_k)   merged weights
    #   wv_ref            : (d_model, H*d_v)
    #   wfc_ref           : (H*d_v, d_model)
    #   out_ref           : (Bblk, S, d_model)
    #   attn_refs[0]      : (Bblk, H, S, S)    (only if attention probs are requested)
    Bblk, S, _ = q_ref.shape
    H = n_heads
    rows = Bblk * S

    # Flatten (batch block, seq) into the row axis — free leading-dim reshape.
    xq = q_ref[...].reshape(rows, d_model)
    xk = k_ref[...].reshape(rows, d_model)
    xv = v_ref[...].reshape(rows, d_model)

    # Merged projections: one wide matmul per input (N = H*d_k = 64), no head broadcast.
    q = jnp.dot(xq, wq_ref[...], preferred_element_type=jnp.float32)   # (rows, H*d_k)
    k = jnp.dot(xk, wk_ref[...], preferred_element_type=jnp.float32)   # (rows, H*d_k)
    v = jnp.dot(xv, wv_ref[...], preferred_element_type=jnp.float32)   # (rows, H*d_v)

    q3 = q.reshape(Bblk, S, H * d_k)
    k3 = k.reshape(Bblk, S, H * d_k)
    v3 = v.reshape(Bblk, S, H * d_v)

    # Per-head split (static lane slices) only where it is unavoidable: QK^T and attn@V.
    # Heads land on a leading axis and (batch, head) are collapsed into one einsum batch dim.
    qh = jnp.stack([q3[:, :, h * d_k:(h + 1) * d_k] for h in range(H)], axis=1)
    kh = jnp.stack([k3[:, :, h * d_k:(h + 1) * d_k] for h in range(H)], axis=1)
    vh = jnp.stack([v3[:, :, h * d_v:(h + 1) * d_v] for h in range(H)], axis=1)
    qn = qh.reshape(Bblk * H, S, d_k)
    kn = kh.reshape(Bblk * H, S, d_k)
    vn = vh.reshape(Bblk * H, S, d_v)

    # Scaled dot-product attention; K consumed untransposed.
    scale = jnp.float32(1.0 / math.sqrt(d_k))
    scores = jnp.einsum('nqd,nkd->nqk', qn, kn,
                        preferred_element_type=jnp.float32) * scale     # (Bblk*H, S, S)
    # Additive mask bias (broadcast over heads) instead of compare + select.
    scores = scores.reshape(Bblk, H, S, S) + bias_ref[...][:, None, :, :]

    m = jnp.max(scores, axis=-1, keepdims=True)
    e = jnp.exp(scores - m)
    denom = jnp.sum(e, axis=-1, keepdims=True)
    attn = e * pl.reciprocal(denom, approx=False)                       # exact, EUP slot
    if attn_refs:
        attn_refs[0][...] = attn                                        # single full-block store

    ctx = jnp.einsum('nqk,nkd->nqd', attn.reshape(Bblk * H, S, S), vn,
                     preferred_element_type=jnp.float32)                # (Bblk*H, S, d_v)
    ctx4 = ctx.reshape(Bblk, H, S, d_v)
    # Re-merge heads into the lane dim (head-order concat == torch's reshape(B,S,H*d_v)).
    ctx_m = jnp.concatenate([ctx4[:, h] for h in range(H)], axis=-1)    # (Bblk, S, H*d_v)
    ctx_m = ctx_m.reshape(rows, H * d_v)

    # fc projection: one matmul with a 64-deep contraction, then residual on input_Q.
    y = jnp.dot(ctx_m, wfc_ref[...], preferred_element_type=jnp.float32) + xq

    # LayerNorm(d_model) with default gamma=1, beta=0 (biased variance, like torch).
    mean = jnp.mean(y, axis=-1, keepdims=True)
    var = jnp.mean((y - mean) ** 2, axis=-1, keepdims=True)
    out = (y - mean) * jax.lax.rsqrt(var + LN_EPS)
    out_ref[...] = out.reshape(Bblk, S, d_model).astype(out_ref.dtype)


def multi_head_attention(input_q, input_k, input_v, attn_mask,
                         w_q, w_k, w_v, w_fc,
                         *, n_heads=N_HEADS, d_k=D_K, d_v=D_V,
                         batch_block=None, return_attn=True):
    """Pallas MHA.  Weights are [in_features, out_features] (transposed vs. nn.Linear)."""
    B, S, d_model = input_q.shape

    # Fat grid steps: default to at most 2 steps (amortizes step overhead on 1-TC chips,
    # keeps 2 steps so both v7x TensorCores get work).
    if batch_block is None:
        batch_block = max(1, B // 2)
    if B % batch_block != 0:
        batch_block = 1
    num_blocks = B // batch_block

    # Additive mask bias computed once in the wrapper (exactly masked_fill(-1e9) for any row
    # that has at least one unmasked entry).
    mask_bias = jnp.where(attn_mask != 0, jnp.float32(-1e9), jnp.float32(0.0))

    kernel = functools.partial(_mha_kernel, n_heads=n_heads, d_k=d_k,
                               d_v=d_v, d_model=d_model)

    out_shape = [jax.ShapeDtypeStruct((B, S, d_model), jnp.float32)]
    out_specs = [pl.BlockSpec((batch_block, S, d_model), lambda b: (b, 0, 0))]
    if return_attn:
        out_shape.append(jax.ShapeDtypeStruct((B, n_heads, S, S), jnp.float32))
        out_specs.append(pl.BlockSpec((batch_block, n_heads, S, S),
                                      lambda b: (b, 0, 0, 0)))

    grid_spec = pltpu.PrefetchScalarGridSpec(
        num_scalar_prefetch=0,
        grid=(num_blocks,),
        in_specs=[
            pl.BlockSpec((batch_block, S, d_model), lambda b: (b, 0, 0)),   # input_Q
            pl.BlockSpec((batch_block, S, d_model), lambda b: (b, 0, 0)),   # input_K
            pl.BlockSpec((batch_block, S, d_model), lambda b: (b, 0, 0)),   # input_V
            pl.BlockSpec((batch_block, S, S), lambda b: (b, 0, 0)),         # mask bias (f32)
            pl.BlockSpec((d_model, n_heads * d_k), lambda b: (0, 0)),       # W_Q (merged)
            pl.BlockSpec((d_model, n_heads * d_k), lambda b: (0, 0)),       # W_K (merged)
            pl.BlockSpec((d_model, n_heads * d_v), lambda b: (0, 0)),       # W_V (merged)
            pl.BlockSpec((n_heads * d_v, d_model), lambda b: (0, 0)),       # W_fc (merged)
        ],
        out_specs=out_specs,
    )

    results = pl.pallas_call(
        kernel,
        out_shape=tuple(out_shape),
        grid_spec=grid_spec,
        compiler_params=pltpu.CompilerParams(
            dimension_semantics=("parallel",)),   # batch axis -> both TCs on v7x
    )(input_q, input_k, input_v, mask_bias, w_q, w_k, w_v, w_fc)

    if return_attn:
        return results[0], results[1]
    return results[0]


def _reference(input_q, input_k, input_v, attn_mask, w_q, w_k, w_v, w_fc,
               n_heads=N_HEADS, d_k=D_K, d_v=D_V):
    B, S, d_model = input_q.shape
    Q = (input_q @ w_q).reshape(B, S, n_heads, d_k).transpose(0, 2, 1, 3)
    K = (input_k @ w_k).reshape(B, S, n_heads, d_k).transpose(0, 2, 1, 3)
    V = (input_v @ w_v).reshape(B, S, n_heads, d_v).transpose(0, 2, 1, 3)
    scores = jnp.einsum('bhqd,bhkd->bhqk', Q, K) / math.sqrt(d_k)
    scores = jnp.where(attn_mask[:, None, :, :] != 0, -1e9, scores)
    attn = jax.nn.softmax(scores, axis=-1)
    ctx = jnp.einsum('bhqk,bhkd->bhqd', attn, V)
    ctx = ctx.transpose(0, 2, 1, 3).reshape(B, S, n_heads * d_v)
    out = ctx @ w_fc + input_q
    mean = jnp.mean(out, axis=-1, keepdims=True)
    var = jnp.mean((out - mean) ** 2, axis=-1, keepdims=True)
    return (out - mean) / jnp.sqrt(var + LN_EPS), attn


if __name__ == "__main__":
    B, S = 2, 8
    key = jax.random.PRNGKey(0)
    k1, k2, k3, k4, k5, k6, k7 = jax.random.split(key, 7)

    input_q = jax.random.normal(k1, (B, S, D_MODEL), dtype=jnp.float32)
    input_k = jax.random.normal(k2, (B, S, D_MODEL), dtype=jnp.float32)
    input_v = jax.random.normal(k3, (B, S, D_MODEL), dtype=jnp.float32)
    # boolean pad mask (True/1 == masked); keep the diagonal unmasked so every row has at
    # least one valid key (matches realistic pad-mask usage).
    mask_raw = jax.random.uniform(k4, (B, S, S)) < 0.2
    eye = jnp.eye(S, dtype=bool)[None]
    attn_mask = jnp.where(eye, False, mask_raw).astype(jnp.int32)

    # deterministic synthetic weights, stored as [in, out]
    w_q = jax.random.normal(k5, (D_MODEL, N_HEADS * D_K), dtype=jnp.float32) * 0.1
    w_k = jax.random.normal(k6, (D_MODEL, N_HEADS * D_K), dtype=jnp.float32) * 0.1
    w_v = jax.random.normal(k7, (D_MODEL, N_HEADS * D_V), dtype=jnp.float32) * 0.1
    w_fc = jax.random.normal(jax.random.PRNGKey(42),
                             (N_HEADS * D_V, D_MODEL), dtype=jnp.float32) * 0.1

    out, attn = multi_head_attention(input_q, input_k, input_v, attn_mask,
                                     w_q, w_k, w_v, w_fc)
    out = jax.block_until_ready(out)
    attn = jax.block_until_ready(attn)

    ref_out, ref_attn = _reference(input_q, input_k, input_v, attn_mask,
                                   w_q, w_k, w_v, w_fc)
    assert jnp.allclose(out, ref_out, atol=1e-4, rtol=1e-4)
    assert jnp.allclose(attn, ref_attn, atol=1e-5, rtol=1e-5)
    print("KERNEL_OK")
</pallas_src>

<mosaic_0001>
module attributes {stable_mosaic.version = 11 : i64} {
  func.func @_mha_kernel(%arg0: i32, %arg1: memref<1x8x32xf32, #tpu.memory_space<vmem>>, %arg2: memref<1x8x32xf32, #tpu.memory_space<vmem>>, %arg3: memref<1x8x32xf32, #tpu.memory_space<vmem>>, %arg4: memref<1x8x8xf32, #tpu.memory_space<vmem>>, %arg5: memref<32x64xf32, #tpu.memory_space<vmem>>, %arg6: memref<32x64xf32, #tpu.memory_space<vmem>>, %arg7: memref<32x64xf32, #tpu.memory_space<vmem>>, %arg8: memref<64x32xf32, #tpu.memory_space<vmem>>, %arg9: memref<1x8x32xf32, #tpu.memory_space<vmem>>, %arg10: memref<1x4x8x8xf32, #tpu.memory_space<vmem>>) attributes {dimension_semantics = [#tpu.dimension_semantics<parallel>], iteration_bounds = array<i64: 2>, scalar_prefetch = 0 : i64, scratch_operands = 0 : i64, tpu.core_type = #tpu.core_type<tc>, window_params = [{transform_indices = @transform_0, window_bounds = array<i64: 1, 8, 32>}, {transform_indices = @transform_1, window_bounds = array<i64: 1, 8, 32>}, {transform_indices = @transform_2, window_bounds = array<i64: 1, 8, 32>}, {transform_indices = @transform_3, window_bounds = array<i64: 1, 8, 8>}, {pipeline_mode = #tpu.pipeline_mode<synchronous>, transform_indices = @transform_4, window_bounds = array<i64: 32, 64>}, {pipeline_mode = #tpu.pipeline_mode<synchronous>, transform_indices = @transform_5, window_bounds = array<i64: 32, 64>}, {pipeline_mode = #tpu.pipeline_mode<synchronous>, transform_indices = @transform_6, window_bounds = array<i64: 32, 64>}, {pipeline_mode = #tpu.pipeline_mode<synchronous>, transform_indices = @transform_7, window_bounds = array<i64: 64, 32>}, {transform_indices = @transform_8, window_bounds = array<i64: 1, 8, 32>}, {transform_indices = @transform_9, window_bounds = array<i64: 1, 4, 8, 8>}]} {
    %c0 = arith.constant 0 : index
    %c0_0 = arith.constant 0 : index
    %c0_1 = arith.constant 0 : index
    %0 = vector.load %arg1[%c0, %c0_0, %c0_1] : memref<1x8x32xf32, #tpu.memory_space<vmem>>, vector<1x8x32xf32>
    %1 = vector.shape_cast %0 : vector<1x8x32xf32> to vector<8x32xf32>
    %c0_2 = arith.constant 0 : index
    %c0_3 = arith.constant 0 : index
    %c0_4 = arith.constant 0 : index
    %2 = vector.load %arg2[%c0_2, %c0_3, %c0_4] : memref<1x8x32xf32, #tpu.memory_space<vmem>>, vector<1x8x32xf32>
    %3 = vector.shape_cast %2 : vector<1x8x32xf32> to vector<8x32xf32>
    %c0_5 = arith.constant 0 : index
    %c0_6 = arith.constant 0 : index
    %c0_7 = arith.constant 0 : index
    %4 = vector.load %arg3[%c0_5, %c0_6, %c0_7] : memref<1x8x32xf32, #tpu.memory_space<vmem>>, vector<1x8x32xf32>
    %5 = vector.shape_cast %4 : vector<1x8x32xf32> to vector<8x32xf32>
    %c0_8 = arith.constant 0 : index
    %c0_9 = arith.constant 0 : index
    %6 = vector.load %arg5[%c0_8, %c0_9] : memref<32x64xf32, #tpu.memory_space<vmem>>, vector<32x64xf32>
    %cst = arith.constant dense<0.000000e+00> : vector<8x64xf32>
    %7 = tpu.matmul %1, %6, %cst {dimension_numbers = #tpu.dot_dimension_numbers<[1], [0], [0], [1], [0, 0, 1, 1], [], []>} : vector<8x32xf32>, vector<32x64xf32>, vector<8x64xf32> -> vector<8x64xf32>
    %c0_10 = arith.constant 0 : index
    %c0_11 = arith.constant 0 : index
    %8 = vector.load %arg6[%c0_10, %c0_11] : memref<32x64xf32, #tpu.memory_space<vmem>>, vector<32x64xf32>
    %cst_12 = arith.constant dense<0.000000e+00> : vector<8x64xf32>
    %9 = tpu.matmul %3, %8, %cst_12 {dimension_numbers = #tpu.dot_dimension_numbers<[1], [0], [0], [1], [0, 0, 1, 1], [], []>} : vector<8x32xf32>, vector<32x64xf32>, vector<8x64xf32> -> vector<8x64xf32>
    %c0_13 = arith.constant 0 : index
    %c0_14 = arith.constant 0 : index
    %10 = vector.load %arg7[%c0_13, %c0_14] : memref<32x64xf32, #tpu.memory_space<vmem>>, vector<32x64xf32>
    %cst_15 = arith.constant dense<0.000000e+00> : vector<8x64xf32>
    %11 = tpu.matmul %5, %10, %cst_15 {dimension_numbers = #tpu.dot_dimension_numbers<[1], [0], [0], [1], [0, 0, 1, 1], [], []>} : vector<8x32xf32>, vector<32x64xf32>, vector<8x64xf32> -> vector<8x64xf32>
    %12 = vector.shape_cast %7 : vector<8x64xf32> to vector<1x8x64xf32>
    %13 = vector.shape_cast %9 : vector<8x64xf32> to vector<1x8x64xf32>
    %14 = vector.shape_cast %11 : vector<8x64xf32> to vector<1x8x64xf32>
    %15 = vector.extract_strided_slice %12 {offsets = [0, 0, 0], sizes = [1, 8, 16], strides = [1, 1, 1]} : vector<1x8x64xf32> to vector<1x8x16xf32>
    %16 = vector.extract_strided_slice %12 {offsets = [0, 0, 16], sizes = [1, 8, 16], strides = [1, 1, 1]} : vector<1x8x64xf32> to vector<1x8x16xf32>
    %17 = vector.extract_strided_slice %12 {offsets = [0, 0, 32], sizes = [1, 8, 16], strides = [1, 1, 1]} : vector<1x8x64xf32> to vector<1x8x16xf32>
    %18 = vector.extract_strided_slice %12 {offsets = [0, 0, 48], sizes = [1, 8, 16], strides = [1, 1, 1]} : vector<1x8x64xf32> to vector<1x8x16xf32>
    %19 = vector.shape_cast %15 : vector<1x8x16xf32> to vector<1x1x8x16xf32>
    %20 = vector.shape_cast %16 : vector<1x8x16xf32> to vector<1x1x8x16xf32>
    %21 = vector.shape_cast %17 : vector<1x8x16xf32> to vector<1x1x8x16xf32>
    %22 = vector.shape_cast %18 : vector<1x8x16xf32> to vector<1x1x8x16xf32>
    %23 = tpu.concatenate %19, %20, %21, %22 in 1 : vector<1x1x8x16xf32>, vector<1x1x8x16xf32>, vector<1x1x8x16xf32>, vector<1x1x8x16xf32> -> vector<1x4x8x16xf32>
    %24 = vector.extract_strided_slice %13 {offsets = [0, 0, 0], sizes = [1, 8, 16], strides = [1, 1, 1]} : vector<1x8x64xf32> to vector<1x8x16xf32>
    %25 = vector.extract_strided_slice %13 {offsets = [0, 0, 16], sizes = [1, 8, 16], strides = [1, 1, 1]} : vector<1x8x64xf32> to vector<1x8x16xf32>
    %26 = vector.extract_strided_slice %13 {offsets = [0, 0, 32], sizes = [1, 8, 16], strides = [1, 1, 1]} : vector<1x8x64xf32> to vector<1x8x16xf32>
    %27 = vector.extract_strided_slice %13 {offsets = [0, 0, 48], sizes = [1, 8, 16], strides = [1, 1, 1]} : vector<1x8x64xf32> to vector<1x8x16xf32>
    %28 = vector.shape_cast %24 : vector<1x8x16xf32> to vector<1x1x8x16xf32>
    %29 = vector.shape_cast %25 : vector<1x8x16xf32> to vector<1x1x8x16xf32>
    %30 = vector.shape_cast %26 : vector<1x8x16xf32> to vector<1x1x8x16xf32>
    %31 = vector.shape_cast %27 : vector<1x8x16xf32> to vector<1x1x8x16xf32>
    %32 = tpu.concatenate %28, %29, %30, %31 in 1 : vector<1x1x8x16xf32>, vector<1x1x8x16xf32>, vector<1x1x8x16xf32>, vector<1x1x8x16xf32> -> vector<1x4x8x16xf32>
    %33 = vector.extract_strided_slice %14 {offsets = [0, 0, 0], sizes = [1, 8, 16], strides = [1, 1, 1]} : vector<1x8x64xf32> to vector<1x8x16xf32>
    %34 = vector.extract_strided_slice %14 {offsets = [0, 0, 16], sizes = [1, 8, 16], strides = [1, 1, 1]} : vector<1x8x64xf32> to vector<1x8x16xf32>
    %35 = vector.extract_strided_slice %14 {offsets = [0, 0, 32], sizes = [1, 8, 16], strides = [1, 1, 1]} : vector<1x8x64xf32> to vector<1x8x16xf32>
    %36 = vector.extract_strided_slice %14 {offsets = [0, 0, 48], sizes = [1, 8, 16], strides = [1, 1, 1]} : vector<1x8x64xf32> to vector<1x8x16xf32>
    %37 = vector.shape_cast %33 : vector<1x8x16xf32> to vector<1x1x8x16xf32>
    %38 = vector.shape_cast %34 : vector<1x8x16xf32> to vector<1x1x8x16xf32>
    %39 = vector.shape_cast %35 : vector<1x8x16xf32> to vector<1x1x8x16xf32>
    %40 = vector.shape_cast %36 : vector<1x8x16xf32> to vector<1x1x8x16xf32>
    %41 = tpu.concatenate %37, %38, %39, %40 in 1 : vector<1x1x8x16xf32>, vector<1x1x8x16xf32>, vector<1x1x8x16xf32>, vector<1x1x8x16xf32> -> vector<1x4x8x16xf32>
    %42 = vector.shape_cast %23 : vector<1x4x8x16xf32> to vector<4x8x16xf32>
    %43 = vector.shape_cast %32 : vector<1x4x8x16xf32> to vector<4x8x16xf32>
    %44 = vector.shape_cast %41 : vector<1x4x8x16xf32> to vector<4x8x16xf32>
    "tpu.trace_start"() <{level = 10 : i32, message = "nqd,nkd->nqk"}> : () -> ()
    %cst_16 = arith.constant dense<0.000000e+00> : vector<4x8x8xf32>
    %45 = tpu.matmul %42, %43, %cst_16 {dimension_numbers = #tpu.dot_dimension_numbers<[2], [2], [1], [1], [0, 0, 0, 1, 1, 1], [0], [0]>} : vector<4x8x16xf32>, vector<4x8x16xf32>, vector<4x8x8xf32> -> vector<4x8x8xf32>
    "tpu.trace_stop"() : () -> ()
    %cst_17 = arith.constant 2.500000e-01 : f32
    %46 = vector.broadcast %cst_17 : f32 to vector<4x8x8xf32>
    %47 = arith.mulf %45, %46 : vector<4x8x8xf32>
    %48 = vector.shape_cast %47 : vector<4x8x8xf32> to vector<1x4x8x8xf32>
    %c0_18 = arith.constant 0 : index
    %c0_19 = arith.constant 0 : index
    %c0_20 = arith.constant 0 : index
    %49 = vector.load %arg4[%c0_18, %c0_19, %c0_20] : memref<1x8x8xf32, #tpu.memory_space<vmem>>, vector<1x8x8xf32>
    %50 = vector.shape_cast %49 : vector<1x8x8xf32> to vector<1x1x8x8xf32>
    %51 = vector.broadcast %50 : vector<1x1x8x8xf32> to vector<1x4x8x8xf32>
    %52 = arith.addf %48, %51 : vector<1x4x8x8xf32>
    %cst_21 = arith.constant dense<0xFF800000> : vector<1x4x8xf32>
    %53 = vector.multi_reduction <maximumf>, %52, %cst_21 [3] : vector<1x4x8x8xf32> to vector<1x4x8xf32>
    %54 = vector.shape_cast %53 : vector<1x4x8xf32> to vector<1x4x8x1xf32>
    %55 = vector.broadcast %54 : vector<1x4x8x1xf32> to vector<1x4x8x8xf32>
    %56 = arith.subf %52, %55 : vector<1x4x8x8xf32>
    %57 = math.exp %56 : vector<1x4x8x8xf32>
    %cst_22 = arith.constant dense<0.000000e+00> : vector<1x4x8xf32>
    %58 = vector.multi_reduction <add>, %57, %cst_22 [3] : vector<1x4x8x8xf32> to vector<1x4x8xf32>
    %59 = vector.shape_cast %58 : vector<1x4x8xf32> to vector<1x4x8x1xf32>
    %60 = tpu.reciprocal %59 : vector<1x4x8x1xf32> -> vector<1x4x8x1xf32>
    %61 = vector.broadcast %60 : vector<1x4x8x1xf32> to vector<1x4x8x8xf32>
    %62 = arith.mulf %57, %61 : vector<1x4x8x8xf32>
    %c0_23 = arith.constant 0 : index
    %c0_24 = arith.constant 0 : index
    %c0_25 = arith.constant 0 : index
    %c0_26 = arith.constant 0 : index
    %63 = vector.load %arg10[%c0_23, %c0_24, %c0_25, %c0_26] : memref<1x4x8x8xf32, #tpu.memory_space<vmem>>, vector<1x4x8x8xf32>
    tpu.vector_store %arg10[%c0_23, %c0_24, %c0_25, %c0_26], %62 {strides = array<i32>} : memref<1x4x8x8xf32, #tpu.memory_space<vmem>>, vector<1x4x8x8xf32>,
    %64 = vector.shape_cast %62 : vector<1x4x8x8xf32> to vector<4x8x8xf32>
    "tpu.trace_start"() <{level = 10 : i32, message = "nqk,nkd->nqd"}> : () -> ()
    %cst_27 = arith.constant dense<0.000000e+00> : vector<4x8x16xf32>
    %65 = tpu.matmul %64, %44, %cst_27 {dimension_numbers = #tpu.dot_dimension_numbers<[2], [1], [1], [2], [0, 0, 0, 1, 1, 2], [0], [0]>} : vector<4x8x8xf32>, vector<4x8x16xf32>, vector<4x8x16xf32> -> vector<4x8x16xf32>
    "tpu.trace_stop"() : () -> ()
    %66 = vector.shape_cast %65 : vector<4x8x16xf32> to vector<1x4x8x16xf32>
    %67 = vector.extract_strided_slice %66 {offsets = [0, 0, 0, 0], sizes = [1, 1, 8, 16], strides = [1, 1, 1, 1]} : vector<1x4x8x16xf32> to vector<1x1x8x16xf32>
    %68 = vector.shape_cast %67 : vector<1x1x8x16xf32> to vector<1x8x16xf32>
    %69 = vector.extract_strided_slice %66 {offsets = [0, 1, 0, 0], sizes = [1, 1, 8, 16], strides = [1, 1, 1, 1]} : vector<1x4x8x16xf32> to vector<1x1x8x16xf32>
    %70 = vector.shape_cast %69 : vector<1x1x8x16xf32> to vector<1x8x16xf32>
    %71 = vector.extract_strided_slice %66 {offsets = [0, 2, 0, 0], sizes = [1, 1, 8, 16], strides = [1, 1, 1, 1]} : vector<1x4x8x16xf32> to vector<1x1x8x16xf32>
    %72 = vector.shape_cast %71 : vector<1x1x8x16xf32> to vector<1x8x16xf32>
    %73 = vector.extract_strided_slice %66 {offsets = [0, 3, 0, 0], sizes = [1, 1, 8, 16], strides = [1, 1, 1, 1]} : vector<1x4x8x16xf32> to vector<1x1x8x16xf32>
    %74 = vector.shape_cast %73 : vector<1x1x8x16xf32> to vector<1x8x16xf32>
    %75 = tpu.concatenate %68, %70, %72, %74 in 2 : vector<1x8x16xf32>, vector<1x8x16xf32>, vector<1x8x16xf32>, vector<1x8x16xf32> -> vector<1x8x64xf32>
    %76 = vector.shape_cast %75 : vector<1x8x64xf32> to vector<8x64xf32>
    %c0_28 = arith.constant 0 : index
    %c0_29 = arith.constant 0 : index
    %77 = vector.load %arg8[%c0_28, %c0_29] : memref<64x32xf32, #tpu.memory_space<vmem>>, vector<64x32xf32>
    %cst_30 = arith.constant dense<0.000000e+00> : vector<8x32xf32>
    %78 = tpu.matmul %76, %77, %cst_30 {dimension_numbers = #tpu.dot_dimension_numbers<[1], [0], [0], [1], [0, 0, 1, 1], [], []>} : vector<8x64xf32>, vector<64x32xf32>, vector<8x32xf32> -> vector<8x32xf32>
    %79 = arith.addf %78, %1 : vector<8x32xf32>
    %cst_31 = arith.constant dense<0.000000e+00> : vector<8xf32>
    %80 = vector.multi_reduction <add>, %79, %cst_31 [1] : vector<8x32xf32> to vector<8xf32>
    %81 = vector.shape_cast %80 : vector<8xf32> to vector<8x1xf32>
    %cst_32 = arith.constant 3.200000e+01 : f32
    %82 = vector.broadcast %cst_32 : f32 to vector<8x1xf32>
    %83 = arith.divf %81, %82 : vector<8x1xf32>
    %84 = vector.broadcast %83 : vector<8x1xf32> to vector<8x32xf32>
    %85 = arith.subf %79, %84 : vector<8x32xf32>
    %86 = arith.mulf %85, %85 : vector<8x32xf32>
    %cst_33 = arith.constant dense<0.000000e+00> : vector<8xf32>
    %87 = vector.multi_reduction <add>, %86, %cst_33 [1] : vector<8x32xf32> to vector<8xf32>
    %88 = vector.shape_cast %87 : vector<8xf32> to vector<8x1xf32>
    %cst_34 = arith.constant 3.200000e+01 : f32
    %89 = vector.broadcast %cst_34 : f32 to vector<8x1xf32>
    %90 = arith.divf %88, %89 : vector<8x1xf32>
    %91 = vector.broadcast %83 : vector<8x1xf32> to vector<8x32xf32>
    %92 = arith.subf %79, %91 : vector<8x32xf32>
    %cst_35 = arith.constant 9.99999974E-6 : f32
    %93 = vector.broadcast %cst_35 : f32 to vector<8x1xf32>
    %94 = arith.addf %90, %93 : vector<8x1xf32>
    %95 = math.rsqrt %94 : vector<8x1xf32>
    %96 = vector.broadcast %95 : vector<8x1xf32> to vector<8x32xf32>
    %97 = arith.mulf %92, %96 : vector<8x32xf32>
    %98 = vector.shape_cast %97 : vector<8x32xf32> to vector<1x8x32xf32>
    %c0_36 = arith.constant 0 : index
    %c0_37 = arith.constant 0 : index
    %c0_38 = arith.constant 0 : index
    %99 = vector.load %arg9[%c0_36, %c0_37, %c0_38] : memref<1x8x32xf32, #tpu.memory_space<vmem>>, vector<1x8x32xf32>
    tpu.vector_store %arg9[%c0_36, %c0_37, %c0_38], %98 {strides = array<i32>} : memref<1x8x32xf32, #tpu.memory_space<vmem>>, vector<1x8x32xf32>,
    return
  }
  func.func @transform_0(%arg0: i32) -> (i32, i32, i32) {
    %c0_i32 = arith.constant 0 : i32
    %c0_i32_0 = arith.constant 0 : i32
    %c0_i32_1 = arith.constant 0 : i32
    return %arg0, %c0_i32, %c0_i32_0 : i32, i32, i32
  }
  func.func @transform_1(%arg0: i32) -> (i32, i32, i32) {
    %c0_i32 = arith.constant 0 : i32
    %c0_i32_0 = arith.constant 0 : i32
    %c0_i32_1 = arith.constant 0 : i32
    return %arg0, %c0_i32, %c0_i32_0 : i32, i32, i32
  }
  func.func @transform_2(%arg0: i32) -> (i32, i32, i32) {
    %c0_i32 = arith.constant 0 : i32
    %c0_i32_0 = arith.constant 0 : i32
    %c0_i32_1 = arith.constant 0 : i32
    return %arg0, %c0_i32, %c0_i32_0 : i32, i32, i32
  }
  func.func @transform_3(%arg0: i32) -> (i32, i32, i32) {
    %c0_i32 = arith.constant 0 : i32
    %c0_i32_0 = arith.constant 0 : i32
    %c0_i32_1 = arith.constant 0 : i32
    return %arg0, %c0_i32, %c0_i32_0 : i32, i32, i32
  }
  func.func @transform_4(%arg0: i32) -> (i32, i32) {
    %c0_i32 = arith.constant 0 : i32
    %c0_i32_0 = arith.constant 0 : i32
    %c0_i32_1 = arith.constant 0 : i32
    return %c0_i32, %c0_i32_0 : i32, i32
  }
  func.func @transform_5(%arg0: i32) -> (i32, i32) {
    %c0_i32 = arith.constant 0 : i32
    %c0_i32_0 = arith.constant 0 : i32
    %c0_i32_1 = arith.constant 0 : i32
    return %c0_i32, %c0_i32_0 : i32, i32
  }
  func.func @transform_6(%arg0: i32) -> (i32, i32) {
    %c0_i32 = arith.constant 0 : i32
    %c0_i32_0 = arith.constant 0 : i32
    %c0_i32_1 = arith.constant 0 : i32
    return %c0_i32, %c0_i32_0 : i32, i32
  }
  func.func @transform_7(%arg0: i32) -> (i32, i32) {
    %c0_i32 = arith.constant 0 : i32
    %c0_i32_0 = arith.constant 0 : i32
    %c0_i32_1 = arith.constant 0 : i32
    return %c0_i32, %c0_i32_0 : i32, i32
  }
  func.func @transform_8(%arg0: i32) -> (i32, i32, i32) {
    %c0_i32 = arith.constant 0 : i32
    %c0_i32_0 = arith.constant 0 : i32
    %c0_i32_1 = arith.constant 0 : i32
    return %arg0, %c0_i32, %c0_i32_0 : i32, i32, i32
  }
  func.func @transform_9(%arg0: i32) -> (i32, i32, i32, i32) {
    %c0_i32 = arith.constant 0 : i32
    %c0_i32_0 = arith.constant 0 : i32
    %c0_i32_1 = arith.constant 0 : i32
    %c0_i32_2 = arith.constant 0 : i32
    return %arg0, %c0_i32, %c0_i32_0, %c0_i32_1 : i32, i32, i32, i32
  }
}

</mosaic_0001>

<bundles_post_ra>
// kernel: tpu_custom_call.1
= control target key start
LH: loop header
LB: loop body
LE: loop exit
PB: predicated region body
PF: predicated region fallthrough
CT: control target
= control target key end

     0   :  { %s1945_s0 = inlined_call_operand.hbm [shape: f32[2,8,32], index: 0, kind: input, shape index: {}]   ;;  %s1946_s1 = inlined_call_operand.hbm [shape: f32[2,8,32], index: 1, kind: input, shape index: {}]   ;;  %s1947_s2 = inlined_call_operand.hbm [shape: f32[2,8,32], index: 2, kind: input, shape index: {}]   ;;  %s1948_s3 = inlined_call_operand.hbm [shape: f32[2,8,8], index: 3, kind: input, shape index: {}]   ;;  %s1949_s4 = inlined_call_operand.vmem [shape: f32[32,64], index: 4, kind: input, shape index: {}]   ;;  %s1950_s5 = inlined_call_operand.vmem [shape: f32[32,64], index: 5, kind: input, shape index: {}]   ;;  %s1951_s6 = inlined_call_operand.vmem [shape: f32[32,64], index: 6, kind: input, shape index: {}]   ;;  %s1952_s7 = inlined_call_operand.vmem [shape: f32[64,32], index: 7, kind: input, shape index: {}]   ;;  %s1953_s8 = inlined_call_operand.hbm [shape: f32[2,8,32], index: 8, kind: output, shape index: {0}]   ;;  %s1954_s9 = inlined_call_operand.hbm [shape: f32[2,4,8,8], index: 9, kind: output, shape index: {1}]  }
   0x1   :  { %1963 = sst [smem:[#allocation24_spill]] %s1946_s1 }
   0x2   :  { %1964 = sst [smem:[#allocation25_spill]] %s1953_s8 }
   0x3   :  { %1965 = sst [smem:[#allocation26_spill]] %s1954_s9 }
   0x4   :  { %15 = vsyncpa [#allocation3], 0 }
   0x5   :  { %17 = vsyncpa [#allocation3 + $0x1], 0 }
   0x6   :  { %18 = vsyncpa [#allocation6], 0 }
   0x7   :  { %20 = vsyncpa [#allocation6 + $0x1], 0 }
   0x8   :  { %21 = vsyncpa [#allocation9], 0 }
   0x9   :  { %23 = vsyncpa [#allocation9 + $0x1], 0 }
   0xa   :  { %24 = vsyncpa [#allocation4], 0 }
   0xb   :  { %26 = vsyncpa [#allocation4 + $0x1], 0 }
   0xc   :  { %27 = vsyncpa [#allocation12], 0 }
   0xd   :  { %29 = vsyncpa [#allocation12 + $0x1], 0  ;;  %s1592_s30 = smov 0   ;;  %s1594_s10 = smov 0  }
   0xe   :  { %s1596_s11 = smov 0   ;;  %s1598_s12 = smov 0  }
   0xf LB: > { %1966 = sst [smem:[#allocation18_spill]] %s1519_s30  ;;  %s1613_s13 = sadd.s32 4294967295, %s1531_s12   ;;  %s1531_s12 = sphi %s1598_s12, %s1983_s12   ;;  %s1527_s11 = sphi %s1596_s11, %s1985_s11   ;;  %s1523_s10 = sphi %s1594_s10, %s1987_s10   ;;  %s1519_s30 = sphi %s1592_s30, %s1986_s30  }
  0x10   : > { %1967 = sst [smem:[#allocation19_spill]] %s1527_s11  ;;  %s1168_s14 = sadd.s32 4294967294, %s1531_s12  }
  0x11   : > { %1968 = sst [smem:[#allocation20_spill]] %s1531_s12  ;;  %s1617_s15 = sadd.s32 1, %s1531_s12  }
  0x12   : > { %1969 = sst [smem:[#allocation21_spill]] %s1617_s15  ;;  %s42_s16 = sadd.s32 1, %s1527_s11 }
  0x13   : > { %s39_s17 = ssub.s32 %s1531_s12, %s1617_s15  ;;  %p49_p0 = scmp.ne.s32.totalorder %s1527_s11, %s1523_s10 }
  0x14   : > { %p40_p1 = scmp.eq.s32.totalorder %s39_s17, 0  ;;  %p50_p2 = scmp.eq.s32.totalorder %s1531_s12, 0 }
  0x15   : > { %p55_p3 = scmp.ne.s32.totalorder %s1523_s10, %s1519_s30  ;;  %p56_p4 = scmp.eq.s32.totalorder %s1613_s13, 0 }
  0x16   : > { %s1629_s18 = scalar_select %p40_p1, %s1527_s11, %s42_s16  }
  0x17   : > { %p51_p5 = por %p50_p2, %p49_p0  ;;  %p1631_p6 = por %p56_p4, %p55_p3 }
  0x18   : > { %1970 = sst [smem:[#allocation22_spill]] %s1629_s18  ;;  %p241_p7 = scmp.eq.s32.totalorder %s1613_s13, 1 }
  0x19   : > { %p247_p8 = scmp.eq.s32.totalorder %s1168_s14, 1  ;;  %p1170_p9 = scmp.ge.s32.totalorder %s1531_s12, 2 }
  0x1a   : > { %p1242_p10 = scmp.lt.s32.totalorder %s1531_s12, 2  ;;  %p1638_p11 = por %p241_p7, %p49_p0 }
  0x1b   : > { %p1642_p12 = por %p247_p8, %p55_p3  ;;  %s1647_s22 = sand.u32 1, %s1527_s11  }
  0x1c   : > { %s1650_s23 = sshll.u32 %s1531_s12, 3  ;;  %s1653_s24 = sshll.u32 %s1647_s22, 3 }
  0x1d   : > { %s1973_s21 = scalar_select %p1642_p12, 1, 0 }
  0x1e   : > { %p1655_p13 = pnand %p1242_p10, %p51_p5  ;;  %s324_s26 = sand.u32 1, %s1531_s12  }
  0x1f   : > { %1974 = sst [smem:[#allocation23_spill]] %s1973_s21  ;;  %s328_s14 = scalar_lea.vmem [#allocation5], %s1653_s24 }
  0x20   : > { %s1976_s1 = sld [smem:[#allocation24_spill]]  ;;  %s336_s16 = sshll.u32 %s328_s14, 4  ;;  %s337_s16 = int_to_ptr.vmem [resolvable:$true] %s336_s16 }
  0x21   : > { %p1179_p0 = scmp.ge.s32.totalorder %s1531_s12, 1  ;;  %s1666_s18 = scalar_lea.sflag [#allocation6], %s324_s26 }
  0x22   : > { %p1309_p2 = pneg %p1655_p13 }
  0x26   : > { %s332_s29 = scalar_lea.hbm %s1976_s1, %s1650_s23  ;;  %s1312_s14 = scalar_lea.hbm %s1976_s1, 16 }
  0x27   : > { %s334_s17 = sshll.u32 %s332_s29, 4  ;;  %s335_s17 = int_to_ptr.hbm [resolvable:$true] %s334_s17 }
  0x28   : > { %s1305_s11 = sshra.s32 %s335_s17, 4  ;;  %s1306_s11 = int_to_ptr.hbm [resolvable:$true] %s1305_s11 }
  0x29   : > { %s1307_s15 = scalar_lea.hbm %s1306_s11, 8  ;;  %p1313_p5 = scmp.lt.s32.totalorder %s1306_s11, %s1976_s1 }
  0x2a   : > { %p1308_p1 = scmp.ne.s32.totalorder %s1306_s11, %s1307_s15  ;;  %p1314_p7 = scmp.lt.s32.totalorder %s1312_s14, %s1307_s15 }
  0x2c   : > { %p1310_p3 = pnand %p1309_p2, %p1308_p1  ;;  %p1315_p8 = por %p1314_p7, %p1313_p5 }
  0x2e   : > { %p1311_p4 = pneg %p1310_p3 }
  0x30   : > { %p1316_p10 = pnand %p1315_p8, %p1311_p4 }
  0x32   : > { %1319 = shalt.err (!%p1316_p10)
}
  0x33   : > { %1228 = dma.hbm_to_vmem [thread:$0]  (!%p1655_p13), %s335_s17, 128, %s337_s16, %s1666_s18  }
  0x34   : > { %p379_p1 = scmp.lt.s32.totalorder %s1531_s12, 3  ;;  %s313_s21 = scalar_lea.hbm %s1945_s0, %s1650_s23 }
  0x35   : > { %s315_s15 = sshll.u32 %s313_s21, 4  ;;  %s309_s28 = scalar_lea.vmem [#allocation2], %s1653_s24  ;;  %s316_s15 = int_to_ptr.hbm [resolvable:$true] %s315_s15 }
  0x36   : > { %p1689_p3 = pnand %p1179_p0, %p379_p1  ;;  %s317_s14 = sshll.u32 %s309_s28, 4  ;;  %s318_s14 = int_to_ptr.vmem [resolvable:$true] %s317_s14 }
  0x37   : > { %s306_s29 = scalar_lea.sflag [#allocation3], %s1647_s22  ;;  %s1335_s1 = sshra.s32 %s316_s15, 4  ;;  %s1336_s1 = int_to_ptr.hbm [resolvable:$true] %s1335_s1 }
  0x38   : > { %s1337_s30 = scalar_lea.hbm %s1336_s1, 8  ;;  %s1342_s26 = scalar_lea.hbm %s1945_s0, 16 }
  0x39   : > { %p1338_p4 = scmp.ne.s32.totalorder %s1336_s1, %s1337_s30  ;;  %p1343_p0 = scmp.lt.s32.totalorder %s1336_s1, %s1945_s0 }
  0x3a   : > { %p1344_p8 = scmp.lt.s32.totalorder %s1342_s26, %s1337_s30 }
  0x3b   : > { %p1340_p5 = pnand %p1338_p4, %p1309_p2 }
  0x3c   : > { %p1345_p10 = por %p1344_p8, %p1343_p0 }
  0x3d   : > { %p1341_p7 = pneg %p1340_p5 }
  0x3f   : > { %p1346_p1 = pnand %p1345_p10, %p1341_p7 }
  0x41   : > { %1349 = shalt.err (!%p1346_p1)
}
  0x42   : > { %1225 = dma.hbm_to_vmem [thread:$0]  (!%p1655_p13), %s316_s15, 128, %s318_s14, %s306_s29  }
  0x43   : > { %s351_s8 = scalar_lea.hbm %s1947_s2, %s1650_s23  ;;  %s347_s16 = scalar_lea.vmem [#allocation7], %s1653_s24 }
  0x44   : > { %s355_s17 = sshll.u32 %s347_s16, 4  ;;  %s353_s9 = sshll.u32 %s351_s8, 4  ;;  %s356_s17 = int_to_ptr.vmem [resolvable:$true] %s355_s17  ;;  %s354_s9 = int_to_ptr.hbm [resolvable:$true] %s353_s9 }
  0x45   : > { %s1365_s1 = sshra.s32 %s354_s9, 4  ;;  %s1372_s15 = scalar_lea.hbm %s1947_s2, 16  ;;  %s1366_s1 = int_to_ptr.hbm [resolvable:$true] %s1365_s1 }
  0x46   : > { %s1367_s30 = scalar_lea.hbm %s1366_s1, 8  ;;  %p1373_p0 = scmp.lt.s32.totalorder %s1366_s1, %s1947_s2 }
  0x47   : > { %p1368_p4 = scmp.ne.s32.totalorder %s1366_s1, %s1367_s30  ;;  %p1374_p8 = scmp.lt.s32.totalorder %s1372_s15, %s1367_s30 }
  0x49   : > { %p1370_p5 = pnand %p1368_p4, %p1309_p2  ;;  %p1375_p10 = por %p1374_p8, %p1373_p0 }
  0x4b   : > { %p1371_p7 = pneg %p1370_p5 }
  0x4d   : > { %p1376_p1 = pnand %p1375_p10, %p1371_p7 }
  0x4f   : > { %1379 = shalt.err (!%p1376_p1)
}
  0x50   : > { %1231 = dma.hbm_to_vmem [thread:$0]  (!%p1655_p13), %s354_s9, 128, %s356_s17, %s1666_s18  }
  0x51   : > { %s370_s21 = scalar_lea.hbm %s1948_s3, %s1650_s23  ;;  %s366_s16 = scalar_lea.vmem [#allocation8], %s1653_s24 }
  0x52   : > { %s372_s28 = sshll.u32 %s370_s21, 4  ;;  %s374_s12 = sshll.u32 %s366_s16, 4  ;;  %s373_s28 = int_to_ptr.hbm [resolvable:$true] %s372_s28  ;;  %s375_s12 = int_to_ptr.vmem [resolvable:$true] %s374_s12 }
  0x53   : > { %s363_s1 = scalar_lea.sflag [#allocation9], %s1647_s22  ;;  %s1395_s30 = sshra.s32 %s373_s28, 4  ;;  %s1396_s30 = int_to_ptr.hbm [resolvable:$true] %s1395_s30 }
  0x54   : > { %s1397_s26 = scalar_lea.hbm %s1396_s30, 8  ;;  %s1402_s18 = scalar_lea.hbm %s1948_s3, 16 }
  0x55   : > { %p1398_p4 = scmp.ne.s32.totalorder %s1396_s30, %s1397_s26  ;;  %p1403_p0 = scmp.lt.s32.totalorder %s1396_s30, %s1948_s3 }
  0x56   : > { %p1404_p8 = scmp.lt.s32.totalorder %s1402_s18, %s1397_s26 }
  0x57   : > { %p1400_p5 = pnand %p1398_p4, %p1309_p2 }
  0x58   : > { %p1405_p10 = por %p1404_p8, %p1403_p0 }
  0x59   : > { %p1401_p7 = pneg %p1400_p5 }
  0x5b   : > { %p1406_p1 = pnand %p1405_p10, %p1401_p7 }
  0x5d   : > { %1409 = shalt.err (!%p1406_p1)
}
  0x5e   : > { %1234 = dma.hbm_to_vmem [thread:$0]  (!%p1655_p13), %s373_s28, 128, %s375_s12, %s363_s1  }
  0x5f   : > { %383 = sbr.rel (%p1689_p3) target bundleno = 1422 (0x58e), region = 52  ;;  %s1743_s22 = sand.u32 (!%p1689_p3), 1, %s1523_s10  }
  0x60   : > { %s1746_s24 = sshll.u32 (!%p1689_p3), %s1743_s22, 3  ;;  %s386_s14 = scalar_lea.sflag (!%p1689_p3), [#allocation3], %s1743_s22 }
  0x61   : > { %s389_s29 = scalar_lea.vmem (!%p1689_p3), [#allocation2], %s1746_s24 }
  0x64   : > { %1498 = dma.done.wait (%p1631_p6), %s386_s14, 128  }
  0x65   : > { %1500 = vsyncadd (%p1631_p6), %s386_s14, 4294967168  ;;  %s395_s25 = sand.u32 1, %s1613_s13   ;;  %s399_s8 = scalar_lea.vmem [#allocation5], %s1746_s24 }
  0x66   : > { %s396_s11 = scalar_lea.sflag [#allocation6], %s395_s25 }
  0x67   : > { %1502 = dma.done.wait (%p1631_p6), %s396_s11, 256  }
  0x68   : > { %1504 = vsyncadd (%p1631_p6), %s396_s11, 4294967040  ;;  %s409_s27 = scalar_lea.vmem [#allocation7], %s1746_s24  ;;  %s416_s21 = scalar_lea.sflag [#allocation9], %s1743_s22 }
  0x69   : > { %s419_s28 = scalar_lea.vmem [#allocation8], %s1746_s24 }
  0x6a   : > { %1506 = dma.done.wait (%p1631_p6), %s416_s21, 128  }
  0x6b   : > { %1508 = vsyncadd (%p1631_p6), %s416_s21, 4294967168  ;;  %v481_v0 = vld [vmem:[%s1949_s4 + $0x18] sm:$0xff]  ;;  %v480_v2 = vld [vmem:[%s1949_s4 + $0x10] sm:$0xff]  ;;  %vm482_vm0 = vcmask 261120   ;;  %vm584_vm1 = vcmask 130048   ;;  %s1533_s12 = smov 96  }
  0x6c   : > { %v509_v1 = vld [vmem:[%s1950_s5 + $0x18] sm:$0xff]  ;;  %498 = vmatpush.msra.mxu0 %v481_v0  ;;  %v508_v3 = vld [vmem:[%s1950_s5 + $0x10] sm:$0xff]  ;;  %v479_v4 = vld [vmem:[%s1949_s4 + $0x8] sm:$0xff]  ;;  %s1534_s1 = smov 112   ;;  %vm690_vm2 = vcmask 64512   ;;  %s1536_s23 = smov 32  }
  0x6d   : > { %525 = vmatpush.msra.mxu1 %v509_v1  ;;  %v507_v5 = vld [vmem:[%s1950_s5 + $0x8] sm:$0xff]  ;;  %v478_v6 = vld [vmem:[%s1949_s4] sm:$0xff]  ;;  %v476_v9 = vld [vmem:[%s399_s8] sm:$0xff]  ;;  %s1537_s14 = smov 48   ;;  %s1538_s25 = smov 16  }
  0x6e   : > { %499 = vmatpush.msra.mxu0 %v480_v2  ;;  %v506_v7 = vld [vmem:[%s1950_s5] sm:$0xff]  ;;  %v685_v19 = vld [vmem:[%s419_s28] sm:$0xff]  ;;  %v534_v25 = vld [vmem:[%s1951_s6 + $0x8] sm:$0xff]  ;;  %s1978_s21 = sld [smem:[#allocation26_spill]] }
  0x6f   : > { %526 = vmatpush.msra.mxu1 %v508_v3  ;;  %v1791_v8 = vld [vmem:[%s389_s29] sm:$0xff]  ;;  %s1535_s29 = smov 80   ;;  %v536_v23 = vld [vmem:[%s1951_s6 + $0x18] sm:$0xff]  ;;  %v535_v24 = vld [vmem:[%s1951_s6 + $0x10] sm:$0xff] }
  0x70   : > { %500 = vmatpush.msra.mxu0 %v479_v4  ;;  %552 = vmatpush.msra.mxu2 %v536_v23  ;;  %v533_v26 = vld [vmem:[%s1951_s6] sm:$0xff] }
  0x71   : > { %527 = vmatpush.msra.mxu1 %v507_v5  ;;  %v477_v27 = vld [vmem:[%s409_s27] sm:$0xff]  ;;  %s1185_s27 = sshll.u32 %s1743_s22, 5 }
  0x72   : > { %501 = vmatpush.msra.mxu0 %v478_v6  ;;  %553 = vmatpush.msra.mxu2 %v535_v24  ;;  %s1846_s17 = scalar_lea.vmem [#allocation11], %s1185_s27 }
  0x73   : > { %528 = vmatpush.msra.mxu1 %v506_v7  ;;  %1186 = vmatmul.msk.f32.vlgmr.msra.gmra.mxu0 %vm482_vm0, %v1791_v8 }
  0x74   : > { %1187 = vmatmul.msk.f32.vlgmr.msra.gmra.mxu1 %vm482_vm0, %v476_v9  ;;  %554 = vmatpush.msra.mxu2 %v534_v25  ;;  %s1445_s9 = scalar_lea.hbm %s1978_s21, 64 }
  0x76   : > { %555 = vmatpush.msra.mxu2 %v533_v26 }
  0x77   : > { %1188 = vmatmul.msk.f32.vlgmr.msra.gmra.mxu2 %vm482_vm0, %v477_v27 }
  0xf0   : > { %v503_v10 = vpop.f32.mrf.mxu0 }
  0xf1   : > { %v530_v11 = vpop.f32.mrf.mxu1  ;;  %563 = vrot.lane.b32.xlu2 %v503_v10, %s1533_s12 }
  0xf2   : > { %570 = vrot.lane.b32.xlu1 %v530_v11, %s1533_s12  ;;  %568 = vrot.lane.b32.xlu0 %v530_v11, %s1534_s1 }
  0xf3   : > { %1189 = vmatpush.xpose.msk.msra.mxu3 %vm584_vm1, %v530_v11 }
  0xf6   : > { %1190 = vmatmul.msk.f32.vlgmr.msra.gmra.mxu3 %vm584_vm1, %v503_v10 }
  0xf9   : > { %565 = vrot.lane.b32.xlu2 %v503_v10, %s1535_s29 }
  0xfa   : > { %572 = vrot.lane.b32.xlu1 %v530_v11, %s1535_s29  ;;  %561 = vrot.lane.b32.xlu0 %v503_v10, %s1534_s1  ;;  %v557_v48 = vpop.f32.mrf.mxu2 }
 0x14b   : > { %v564_v14 = vpop.permute.xlu2 %563 }
 0x153   : > { %v566_v17 = vpop.permute.xlu2 %565 }
 0x164   : > { %v571_v12 = vpop.permute.xlu1 %570  ;;  %v569_v13 = vpop.permute.xlu0 %568 }
 0x165   : > { %1191 = vmatpush.xpose.msk.msrb.mxu3 %vm584_vm1, %v569_v13  ;;  %1193 = vmatpush.xpose.msk.msrb.mxu0 %vm584_vm1, %v571_v12 }
 0x168   : > { %1194 = vmatmul.msk.f32.vlgmr.msrb.gmra.mxu0 %vm584_vm1, %v564_v14 }
 0x169   : > { %809 = vmatpush.msra.mxu3 %v557_v48 }
 0x16c   : > { %v573_v15 = vpop.permute.xlu1 %572  ;;  %v562_v16 = vpop.permute.xlu0 %561 }
 0x16d   : > { %1192 = vmatmul.msk.f32.vlgmr.msrb.gmra.mxu3 %vm584_vm1, %v562_v16  ;;  %1195 = vmatpush.xpose.msk.msrb.mxu1 %vm584_vm1, %v573_v15 }
 0x170   : > { %1196 = vmatmul.msk.f32.vlgmr.msrb.gmra.mxu1 %vm584_vm1, %v566_v17 }
 0x179   : > { %v606_v18 = vpop.f32.mrf.mxu3 }
 0x17a   : > { %v681_v20 = vmul.f32 0.25, %v606_v18 }
 0x17c   : > { %v686_v21 = vadd.f32 %v685_v19, %v681_v20 }
 0x17e   : > { %v691_v22 = vsel %vm690_vm2, %v686_v21, -inf }
 0x17f   : > { %692 = vmax.xlane.f32.xlu0 %v691_v22 }
 0x1e5   : > { %v654_v28 = vpop.f32.mrf.mxu0 }
 0x1e6   : > { %v683_v29 = vmul.f32 0.25, %v654_v28 }
 0x1e8   : > { %v688_v30 = vadd.f32 %v685_v19, %v683_v29 }
 0x1ea   : > { %v697_v31 = vsel %vm690_vm2, %v688_v30, -inf }
 0x1eb   : > { %698 = vmax.xlane.f32.xlu2 %v697_v31 }
 0x1ed   : > { %v678_v32 = vpop.f32.mrf.mxu1 }
 0x1ee   : > { %v684_v33 = vmul.f32 0.25, %v678_v32 }
 0x1f0   : > { %v630_v34 = vpop.f32.mrf.mxu3  ;;  %v689_v35 = vadd.f32 %v685_v19, %v684_v33 }
 0x1f1   : > { %v682_v36 = vmul.f32 0.25, %v630_v34 }
 0x1f2   : > { %v693_v37 = vpop.xlane.xlu0 %692  ;;  %v700_v38 = vsel %vm690_vm2, %v689_v35, -inf }
 0x1f3   : > { %v703_v39 = vsub.f32 %v686_v21, %v693_v37  ;;  %701 = vmax.xlane.f32.xlu2 %v700_v38  ;;  %v687_v40 = vadd.f32 %v685_v19, %v682_v36 }
 0x1f5   : > { %v707_v41 = vmul.f32 1.442695, %v703_v39  ;;  %v694_v42 = vsel %vm690_vm2, %v687_v40, -inf }
 0x1f6   : > { %695 = vmax.xlane.f32.xlu1 %v694_v42 }
 0x1f7   : > { %1285 = vpow2.f32 %v707_v41 }
 0x1fd   : > { %v1286_v43 = vpop.eup %1285 }
 0x1fe   : > { %v715_v44 = vsel %vm690_vm2, %v1286_v43, 0.0 }
 0x1ff   : > { %716 = vadd.xlane.f32.xlu0 %v715_v44 }
 0x25e   : > { %v699_v45 = vpop.xlane.xlu2 %698 }
 0x25f   : > { %v705_v46 = vsub.f32 %v688_v30, %v699_v45 }
 0x261   : > { %v711_v47 = vmul.f32 1.442695, %v705_v46 }
 0x263   : > { %1287 = vpow2.f32 %v711_v47 }
 0x266   : > { %v702_v49 = vpop.xlane.xlu2 %701 }
 0x267   : > { %v706_v50 = vsub.f32 %v689_v35, %v702_v49 }
 0x269   : > { %v1832_v51 = vpop.eup %1287  ;;  %v713_v52 = vmul.f32 1.442695, %v706_v50  ;;  %v696_v53 = vpop.xlane.xlu1 %695 }
 0x26a   : > { %v704_v54 = vsub.f32 %v687_v40, %v696_v53  ;;  %v721_v55 = vsel %vm690_vm2, %v1832_v51, 0.0  ;;  %v906_v53 = vld [vmem:[%s1952_s7 + $0x38] sm:$0xff] }
 0x26b   : > { %1289 = vpow2.f32 %v713_v52  ;;  %722 = vadd.xlane.f32.xlu2 %v721_v55  ;;  %919 = vmatpush.msrb.mxu2 %v906_v53  ;;  %v904_v55 = vld [vmem:[%s1952_s7 + $0x28] sm:$0xff] }
 0x26c   : > { %v709_v56 = vmul.f32 1.442695, %v704_v54  ;;  %v905_v54 = vld [vmem:[%s1952_s7 + $0x30] sm:$0xff] }
 0x26d   : > { %920 = vmatpush.msrb.mxu2 %v905_v54 }
 0x26e   : > { %1291 = vpow2.f32 %v709_v56  ;;  %v903_v56 = vld [vmem:[%s1952_s7 + $0x20] sm:$0xff] }
 0x26f   : > { %921 = vmatpush.msrb.mxu2 %v904_v55 }
 0x271   : > { %v1836_v57 = vpop.eup %1289  ;;  %922 = vmatpush.msrb.mxu2 %v903_v56 }
 0x272   : > { %v717_v58 = vpop.xlane.xlu0 %716  ;;  %v724_v59 = vsel %vm690_vm2, %v1836_v57, 0.0 }
 0x273   : > { %1293 = vrcp.f32 %v717_v58  ;;  %725 = vadd.xlane.f32.xlu0 %v724_v59  ;;  %v738_v1 = vand.u32 2147483648, %v717_v58  ;;  %v736_v3 = vand.u32 2147483647, %v717_v58  ;;  %vm732_vm4 = vweird.f32 %v717_v58  ;;  %v900_v59 = vld [vmem:[%s1952_s7 + $0x8] sm:$0xff] }
 0x274   : > { %v1840_v60 = vpop.eup %1291 }
 0x275   : > { %v718_v61 = vsel %vm690_vm2, %v1840_v60, 0.0  ;;  %v739_v5 = vor.u32 1.1754944e-38, %v738_v1  ;;  %vm737_vm6 = vcmp.eq.f32.partialorder %v736_v3, 8.507059e+37 }
 0x276   : > { %719 = vadd.xlane.f32.xlu1 %v718_v61 }
 0x279   : > { %v1294_v62 = vpop.eup %1293 }
 0x27a   : > { %v728_v63 = vmul.f32 %v1294_v62, %v717_v58  ;;  %vm733_vm3 = vweird.f32 %v1294_v62  ;;  %v901_v58 = vld [vmem:[%s1952_s7 + $0x10] sm:$0xff] }
 0x27b   : > { %vm734_vm5 = vmor %vm732_vm4, %vm733_vm3 }
 0x27c   : > { %v729_v0 = vsub.f32 1.0, %v728_v63 }
 0x27e   : > { %v730_v2 = vmul.f32 %v1294_v62, %v729_v0 }
 0x280   : > { %v731_v4 = vadd.f32 %v1294_v62, %v730_v2 }
 0x282   : > { %v735_v6 = vsel %vm734_vm5, %v1294_v62, %v731_v4 }
 0x283   : > { %v740_v7 = vsel %vm737_vm6, %v739_v5, %v735_v6  ;;  %578 = vrot.lane.b32.xlu2 %v557_v48, %s1533_s12  ;;  %vm907_vm6 = vcmask 523264   ;;  %v1539_v6 = vmov 32.0   ;;  %s993_s12 = sshll.u32 %s1846_s17, 4  ;;  %s994_s12 = int_to_ptr.vmem [resolvable:$true] %s993_s12 }
 0x284   : > { %v783_v9 = vmul.f32 %v1286_v43, %v740_v7 }
 0x286   : > { %787 = vst.msk [vmem:[%s1846_s17] sm:$0xff] %vm690_vm2, %v783_v9  ;;  %1197 = vmatmul.msk.f32.vlgmr.msra.gmra.mxu3 %vm690_vm2, %v783_v9 }
 0x287   : > { %581 = vrot.lane.b32.xlu0 %v557_v48, %s1535_s29  ;;  %s967_s29 = scalar_lea.sflag [#allocation12], %s1743_s22 }
 0x28f   : > { %575 = vrot.lane.b32.xlu1 %v557_v48, %s1534_s1 }
 0x2de   : > { %v723_v10 = vpop.xlane.xlu2 %722 }
 0x2df   : > { %1295 = vrcp.f32 %v723_v10  ;;  %v766_v16 = vand.u32 2147483648, %v723_v10  ;;  %v764_v19 = vand.u32 2147483647, %v723_v10  ;;  %vm760_vm8 = vweird.f32 %v723_v10 }
 0x2e1   : > { %v767_v22 = vor.u32 1.1754944e-38, %v766_v16  ;;  %vm765_vm10 = vcmp.eq.f32.partialorder %v764_v19, 8.507059e+37 }
 0x2e5   : > { %v1296_v11 = vpop.eup %1295 }
 0x2e6   : > { %v756_v12 = vmul.f32 %v1296_v11, %v723_v10  ;;  %v726_v13 = vpop.xlane.xlu0 %725  ;;  %v579_v14 = vpop.permute.xlu2 %578  ;;  %vm761_vm7 = vweird.f32 %v1296_v11 }
 0x2e7   : > { %1297 = vrcp.f32 %v726_v13  ;;  %855 = vmatpush.msra.mxu0 %v579_v14  ;;  %vm762_vm9 = vmor %vm760_vm8, %vm761_vm7  ;;  %v780_v29 = vand.u32 2147483648, %v726_v13  ;;  %v778_v32 = vand.u32 2147483647, %v726_v13  ;;  %vm774_vm12 = vweird.f32 %v726_v13 }
 0x2e8   : > { %v757_v15 = vsub.f32 1.0, %v756_v12 }
 0x2e9   : > { %v720_v17 = vpop.xlane.xlu1 %719  ;;  %v781_v36 = vor.u32 1.1754944e-38, %v780_v29  ;;  %vm779_vm15 = vcmp.eq.f32.partialorder %v778_v32, 8.507059e+37 }
 0x2ea   : > { %v758_v18 = vmul.f32 %v1296_v11, %v757_v15  ;;  %1299 = vrcp.f32 %v720_v17  ;;  %v752_v35 = vand.u32 2147483648, %v720_v17  ;;  %v750_v38 = vand.u32 2147483647, %v720_v17 }
 0x2eb   : > { %vm746_vm3 = vweird.f32 %v720_v17  ;;  %1301 = vrcp.f32 %v1539_v6 }
 0x2ec   : > { %v759_v20 = vadd.f32 %v1296_v11, %v758_v18  ;;  %v753_v42 = vor.u32 1.1754944e-38, %v752_v35  ;;  %vm751_vm5 = vcmp.eq.f32.partialorder %v750_v38, 8.507059e+37 }
 0x2ed   : > { %v1298_v21 = vpop.eup %1297 }
 0x2ee   : > { %v763_v23 = vsel %vm762_vm9, %v1296_v11, %v759_v20  ;;  %v770_v24 = vmul.f32 %v1298_v21, %v726_v13  ;;  %vm775_vm11 = vweird.f32 %v1298_v21 }
 0x2ef   : > { %v768_v25 = vsel %vm765_vm10, %v767_v22, %v763_v23  ;;  %vm776_vm13 = vmor %vm774_vm12, %vm775_vm11 }
 0x2f0   : > { %v1300_v26 = vpop.eup %1299  ;;  %v771_v27 = vsub.f32 1.0, %v770_v24  ;;  %v785_v28 = vmul.f32 %v1832_v51, %v768_v25 }
 0x2f1   : > { %v742_v30 = vmul.f32 %v1300_v26, %v720_v17  ;;  %vm747_vm14 = vweird.f32 %v1300_v26  ;;  %v1302_v7 = vpop.eup %1301 }
 0x2f2   : > { %v772_v31 = vmul.f32 %v1298_v21, %v771_v27  ;;  %789 = vst.msk [vmem:[%s1846_s17 + $0x10] sm:$0xff] %vm690_vm2, %v785_v28  ;;  %1199 = vmatmul.msk.f32.vlgmr.msra.gmra.mxu0 %vm690_vm2, %v785_v28  ;;  %vm748_vm4 = vmor %vm746_vm3, %vm747_vm14  ;;  %v935_v9 = vmul.f32 32.0, %v1302_v7 }
 0x2f3   : > { %v743_v33 = vsub.f32 1.0, %v742_v30 }
 0x2f4   : > { %v773_v34 = vadd.f32 %v1298_v21, %v772_v31  ;;  %v936_v10 = vsub.f32 1.0, %v935_v9 }
 0x2f5   : > { %v744_v37 = vmul.f32 %v1300_v26, %v743_v33 }
 0x2f6   : > { %v777_v39 = vsel %vm776_vm13, %v1298_v21, %v773_v34  ;;  %v937_v11 = vmul.f32 %v1302_v7, %v936_v10 }
 0x2f7   : > { %v782_v40 = vsel %vm779_vm15, %v781_v36, %v777_v39  ;;  %v745_v41 = vadd.f32 %v1300_v26, %v744_v37 }
 0x2f8   : > { %v786_v43 = vmul.f32 %v1836_v57, %v782_v40  ;;  %v902_v57 = vld [vmem:[%s1952_s7 + $0x18] sm:$0xff]  ;;  %v938_v12 = vadd.f32 %v1302_v7, %v937_v11 }
 0x2f9   : > { %v749_v44 = vsel %vm748_vm4, %v1300_v26, %v745_v41  ;;  %v582_v45 = vpop.permute.xlu0 %581  ;;  %923 = vmatpush.msrb.mxu2 %v902_v57 }
 0x2fa   : > { %v754_v46 = vsel %vm751_vm5, %v753_v42, %v749_v44  ;;  %878 = vmatpush.msra.mxu1 %v582_v45  ;;  %790 = vst.msk [vmem:[%s1846_s17 + $0x18] sm:$0xff] %vm690_vm2, %v786_v43 }
 0x2fb   : > { %1200 = vmatmul.msk.f32.vlgmr.msra.gmra.mxu1 %vm690_vm2, %v786_v43  ;;  %v784_v47 = vmul.f32 %v1840_v60, %v754_v46  ;;  %924 = vmatpush.msrb.mxu2 %v901_v58  ;;  %v899_v60 = vld [vmem:[%s1952_s7] sm:$0xff] }
 0x2fd   : > { %788 = vst.msk [vmem:[%s1846_s17 + $0x8] sm:$0xff] %vm690_vm2, %v784_v47  ;;  %925 = vmatpush.msrb.mxu2 %v900_v59 }
 0x2ff   : > { %926 = vmatpush.msrb.mxu2 %v899_v60 }
 0x301   : > { %v576_v48 = vpop.permute.xlu1 %575 }
 0x302   : > { %832 = vmatpush.msrb.mxu3 %v576_v48 }
 0x303   : > { %1198 = vmatmul.msk.f32.vlgmr.msrb.gmra.mxu3 %vm690_vm2, %v784_v47  ;;  %vm897_vm2 = vcmask 392192  }
 0x309   : > { %v811_v51 = vpop.f32.mrf.mxu3 }
 0x36f   : > { %v857_v49 = vpop.f32.mrf.mxu0 }
 0x370   : > { %888 = vrot.lane.b32.xlu0 %v857_v49, %s1536_s23 }
 0x378   : > { %v880_v50 = vpop.f32.mrf.mxu1 }
 0x379   : > { %892 = vrot.lane.b32.xlu2 %v880_v50, %s1537_s14  ;;  %s1209_s14 = sshll.u32 %s1613_s13, 5 }
 0x37a   : > { %s992_s16 = scalar_lea.hbm %s1978_s21, %s1209_s14 }
 0x37b   : > { %s995_s1 = sshll.u32 %s992_s16, 4  ;;  %s996_s1 = int_to_ptr.hbm [resolvable:$true] %s995_s1 }
 0x37c   : > { %s1439_s8 = sshra.s32 %s996_s1, 4  ;;  %s1440_s8 = int_to_ptr.hbm [resolvable:$true] %s1439_s8 }
 0x37d   : > { %s1441_s30 = scalar_lea.hbm %s1440_s8, 32  ;;  %p1446_p3 = scmp.lt.s32.totalorder %s1440_s8, %s1978_s21 }
 0x37e   : > { %p1442_p6 = scmp.ne.s32.totalorder %s1440_s8, %s1441_s30  ;;  %p1447_p4 = scmp.lt.s32.totalorder %s1445_s9, %s1441_s30 }
 0x380   : > { %p1443_p13 = pnand %p1442_p6, %p1638_p11  ;;  %p1448_p5 = por %p1447_p4, %p1446_p3 }
 0x382   : > { %p1444_p2 = pneg %p1443_p13 }
 0x384   : > { %p1449_p7 = pnand %p1448_p5, %p1444_p2 }
 0x386   : > { %v834_v52 = vpop.f32.mrf.mxu3 }
 0x387   : > { %884 = vrot.lane.b32.xlu1 %v834_v52, %s1538_s25 }
 0x3d3   : > { %v893_v0 = vpop.permute.xlu2 %892 }
 0x3e2   : > { %v889_v62 = vpop.permute.xlu0 %888 }
 0x3f9   : > { %v885_v61 = vpop.permute.xlu1 %884 }
 0x3fa   : > { %v895_v63 = vsel %vm584_vm1, %v811_v51, %v885_v61  ;;  %vm939_vm1 = vweird.f32 %v1302_v7 }
 0x3fb   : > { %v896_v1 = vsel %vm482_vm0, %v895_v63, %v889_v62  ;;  %v940_v13 = vsel %vm939_vm1, %v1302_v7, %v938_v12 }
 0x3fc   : > { %v898_v2 = vsel %vm897_vm2, %v896_v1, %v893_v0 }
 0x3fd   : > { %1201 = vmatmul.msk.f32.vlgmr.msrb.gmra.mxu2 %vm907_vm6, %v898_v2 }
 0x480   : > { %v928_v3 = vpop.f32.mrf.mxu2 }
 0x481   : > { %v929_v4 = vadd.f32 %v928_v3, %v1791_v8 }
 0x483   : > { %v931_v5 = vsel %vm482_vm0, %v929_v4, 0.0 }
 0x484   : > { %932 = vadd.xlane.f32.xlu1 %v931_v5 }
 0x4f7   : > { %v933_v14 = vpop.xlane.xlu1 %932 }
 0x4f8   : > { %v941_v15 = vmul.f32 %v940_v13, %v933_v14 }
 0x4fa   : > { %v942_v16 = vsub.f32 %v929_v4, %v941_v15 }
 0x4fc   : > { %v943_v8 = vmul.f32 %v942_v16, %v942_v16 }
 0x4fe   : > { %v944_v17 = vsel %vm482_vm0, %v943_v8, 0.0 }
 0x4ff   : > { %945 = vadd.xlane.f32.xlu0 %v944_v17 }
 0x500   : > { %1452 = shalt.err (!%p1449_p7)
}
 0x501   : > { %s1540_s17 = smov 128   ;;  %s1541_s19 = smov 8  }
 0x502   : > { %1219 = dma.vmem_to_hbm [thread:$0]  (%p1638_p11), %s994_s12, 512, %s996_s1, %s967_s29, %s1540_s17, %s1540_s17, %s1541_s19  }
 0x503   : > { %s1204_s27 = sshll.u32 %s1613_s13, 3  ;;  %s1979_s25 = sld [smem:[#allocation25_spill]] }
 0x504   : > { %s467_s16 = scalar_lea.vmem [#allocation10], %s1746_s24  ;;  %s962_s13 = scalar_lea.sflag [#allocation4], %s1743_s22 }
 0x505   : > { %s979_s12 = sshll.u32 %s467_s16, 4  ;;  %s980_s12 = int_to_ptr.vmem [resolvable:$true] %s979_s12 }
 0x509   : > { %s977_s11 = scalar_lea.hbm %s1979_s25, %s1204_s27  ;;  %s1473_s24 = scalar_lea.hbm %s1979_s25, 16 }
 0x50a   : > { %s981_s1 = sshll.u32 %s977_s11, 4  ;;  %s982_s1 = int_to_ptr.hbm [resolvable:$true] %s981_s1 }
 0x50b   : > { %s1467_s29 = sshra.s32 %s982_s1, 4  ;;  %s1468_s29 = int_to_ptr.hbm [resolvable:$true] %s1467_s29 }
 0x50c   : > { %s1469_s8 = scalar_lea.hbm %s1468_s29, 8  ;;  %p1474_p1 = scmp.lt.s32.totalorder %s1468_s29, %s1979_s25 }
 0x50d   : > { %p1470_p0 = scmp.ne.s32.totalorder %s1468_s29, %s1469_s8  ;;  %p1475_p6 = scmp.lt.s32.totalorder %s1473_s24, %s1469_s8 }
 0x50f   : > { %p1471_p8 = pnand %p1470_p0, %p1638_p11  ;;  %p1476_p13 = por %p1475_p6, %p1474_p1 }
 0x511   : > { %p1472_p10 = pneg %p1471_p8 }
 0x513   : > { %p1477_p2 = pnand %p1476_p13, %p1472_p10 }
 0x572   : > { %v946_v18 = vpop.xlane.xlu0 %945 }
 0x573   : > { %v947_v19 = vmul.f32 %v946_v18, %v940_v13 }
 0x575   : > { %v948_v20 = vadd.f32 1e-05, %v947_v19 }
 0x577   : > { %1303 = vrsqrt.f32 %v948_v20  ;;  %vm955_vm8 = vweird.f32 %v948_v20 }
 0x57d   : > { %v1304_v21 = vpop.eup %1303 }
 0x57e   : > { %v950_v22 = vmul.f32 %v1304_v21, %v948_v20  ;;  %vm956_vm7 = vweird.f32 %v1304_v21 }
 0x57f   : > { %vm957_vm9 = vmor %vm955_vm8, %vm956_vm7 }
 0x580   : > { %v951_v23 = vmul.f32 %v1304_v21, %v950_v22 }
 0x582   : > { %v952_v24 = vmul.f32 0.5, %v951_v23 }
 0x584   : > { %v953_v25 = vsub.f32 1.5, %v952_v24 }
 0x586   : > { %v954_v26 = vmul.f32 %v1304_v21, %v953_v25 }
 0x588   : > { %v958_v27 = vsel %vm957_vm9, %v1304_v21, %v954_v26 }
 0x589   : > { %v959_v28 = vmul.f32 %v958_v27, %v942_v16 }
 0x58b   : > { %960 = vst.msk [vmem:[%s467_s16] sm:$0xff] %vm482_vm0, %v959_v28 }
 0x58c   : > { %1480 = shalt.err (!%p1477_p2)
}
 0x58d   : > { %1218 = dma.vmem_to_hbm [thread:$0]  (%p1638_p11), %s980_s12, 128, %s982_s1, %s962_s13  }
 0x58e PF: > { %s1980_s22 = sld [smem:[#allocation18_spill]]  ;;  %p1236_p3 = pnand %p1170_p9, %p1642_p12 }
 0x590   : > { %p1237_p4 = pneg %p1236_p3 }
 0x594   : > { %s1010_s17 = sand.u32 1, %s1980_s22  }
 0x595   : > { %s1011_s19 = scalar_lea.sflag [#allocation4], %s1010_s17 }
 0x596   : > { %1510 = dma.done.wait (%p1237_p4), %s1011_s19, 128  }
 0x597   : > { %1512 = vsyncadd (%p1237_p4), %s1011_s19, 4294967168  ;;  %s1021_s27 = scalar_lea.sflag [#allocation12], %s1010_s17 }
 0x598   : > { %1514 = dma.done.wait (%p1237_p4), %s1021_s27, 512  }
 0x599   : > { %1516 = vsyncadd (%p1237_p4), %s1021_s27, 4294966784  ;;  %s1983_s12 = sld [smem:[#allocation21_spill]]  ;;  %s1986_s30 = smov %s1523_s10 }
 0x59a   : > { %s1984_s23 = sld [smem:[#allocation19_spill]] }
 0x59b   : > { %s1985_s11 = sld [smem:[#allocation22_spill]] }
 0x59f   : > { %p32_p11 = scmp.ge.s32.totalorder %s1983_s12, 4  }
 0x5a0   : > { %s1987_s10 = smov %s1984_s23 }
 0x5a1   :  { %34 = sbr.rel (!%p32_p11) target bundleno = 15 (0xf), region = 151 }
 0x5a6   :  { %1027 = vsyncpa [#allocation3], 1 }
 0x5a7   :  { %1029 = vsyncpa [#allocation3 + $0x1], 1 }
 0x5a8   :  { %1030 = vsyncpa [#allocation6], 1 }
 0x5a9   :  { %1032 = vsyncpa [#allocation6 + $0x1], 1 }
 0x5aa   :  { %1033 = vsyncpa [#allocation9], 1 }
 0x5ab   :  { %1035 = vsyncpa [#allocation9 + $0x1], 1 }
 0x5ac   :  { %1036 = vsyncpa [#allocation4], 1 }
 0x5ad   :  { %1038 = vsyncpa [#allocation4 + $0x1], 1 }
 0x5ae   :  { %1039 = vsyncpa [#allocation12], 1 }
 0x5af   :  { %1041 = vsyncpa [#allocation12 + $0x1], 1 }

</bundles_post_ra>
